<compile_context>
chip_gen: v5e
topology: v5e:2x2
jax: 0.10.0
libtpu: 0.0.40
codegen_flags: <defaults>
</compile_context>

<pallas_src>
import functools

import jax
import jax.numpy as jnp
from jax.experimental import pallas as pl
from jax.experimental.pallas import tpu as pltpu

_LANE = 128


def _round_up(x, m):
    return (x + m - 1) // m * m


# ---------------------------------------------------------------------------
# Pallas kernel: tiled matmul (K reduction axis) + bias + residual + ReLU + quant
# ---------------------------------------------------------------------------
def _fused_matmul_kernel(a_ref, b_ref, bias_ref, *rest, apply_residual,
                         apply_relu, apply_quant, act_scale):
    if apply_residual:
        res_ref, o_ref, acc_ref = rest
    else:
        o_ref, acc_ref = rest

    k = pl.program_id(1)

    @pl.when(k == 0)
    def _():
        acc_ref[...] = jnp.zeros_like(acc_ref)

    acc_ref[...] += jnp.dot(a_ref[...], b_ref[...],
                            preferred_element_type=jnp.float32)

    @pl.when(k == pl.num_programs(1) - 1)
    def _():
        out = acc_ref[...] + bias_ref[...]          # folded BatchNorm bias (eval)
        if apply_residual:
            out = out + res_ref[...].astype(jnp.float32)
        if apply_relu:
            out = jnp.maximum(out, 0.0)
        if apply_quant:
            # Int8ActPerTensorFloat simulated as fake-quant (round, clip, dequant).
            q = jnp.clip(jnp.round(out * (1.0 / act_scale)), -128.0, 127.0)
            out = q * act_scale
        o_ref[...] = out.astype(o_ref.dtype)


def fused_conv_matmul(a, b, bias, residual=None, *, apply_relu, apply_quant,
                      act_scale, out_dtype=jnp.float32):
    """a: (M, K) im2col patches, b: (K, C) BN-scaled weights, bias: (C,) -> (M, C)."""
    M, K = a.shape
    Kb, C = b.shape
    assert K == Kb, (K, Kb)

    # Lane-dense output / weight / bias / residual: pad C to a multiple of 128.
    C_pad = _round_up(C, _LANE)

    # K reduction tiling (single step for small K, 512-chunks for deep layers).
    if K <= 512:
        tk = _round_up(K, 8)
    else:
        tk = 512
    K_pad = _round_up(K, tk)

    # M tiling: up to 512 rows, keep the parallel grid axis >= 2 steps when possible.
    tm = min(512, max(8, _round_up(pl.cdiv(M, 2), 8)))
    M_pad = _round_up(M, tm)

    # bf16 operands to the MXU (f32 accumulation inside the kernel).
    a_p = jnp.zeros((M_pad, K_pad), jnp.bfloat16).at[:M, :K].set(
        a.astype(jnp.bfloat16))
    b_p = jnp.zeros((K_pad, C_pad), jnp.bfloat16).at[:K, :C].set(
        b.astype(jnp.bfloat16))
    bias_p = jnp.zeros((1, C_pad), jnp.float32).at[0, :C].set(
        bias.astype(jnp.float32))

    inputs = [a_p, b_p, bias_p]
    in_specs = [
        pl.BlockSpec((tm, tk), lambda i, k: (i, k)),      # patches tile
        pl.BlockSpec((tk, C_pad), lambda i, k: (k, 0)),   # weight K-chunk
        pl.BlockSpec((1, C_pad), lambda i, k: (0, 0)),    # folded BN bias
    ]

    apply_residual = residual is not None
    res_bytes = 0
    if apply_residual:
        r_p = jnp.zeros((M_pad, C_pad), jnp.float32).at[:M, :C].set(
            residual.astype(jnp.float32))
        inputs.append(r_p)
        in_specs.append(pl.BlockSpec((tm, C_pad), lambda i, k: (i, 0)))
        res_bytes = M_pad * C_pad * 4

    kernel = functools.partial(_fused_matmul_kernel,
                               apply_residual=apply_residual,
                               apply_relu=apply_relu,
                               apply_quant=apply_quant,
                               act_scale=float(act_scale))

    out_itemsize = jnp.dtype(out_dtype).itemsize
    cost = pl.CostEstimate(
        flops=2 * M_pad * K_pad * C_pad,
        transcendentals=0,
        bytes_accessed=(M_pad * K_pad * 2 + K_pad * C_pad * 2 + C_pad * 4
                        + res_bytes + M_pad * C_pad * out_itemsize),
    )

    out = pl.pallas_call(
        kernel,
        out_shape=jax.ShapeDtypeStruct((M_pad, C_pad), out_dtype),
        grid_spec=pltpu.PrefetchScalarGridSpec(
            num_scalar_prefetch=0,
            grid=(M_pad // tm, K_pad // tk),
            in_specs=in_specs,
            out_specs=pl.BlockSpec((tm, C_pad), lambda i, k: (i, 0)),
            scratch_shapes=[pltpu.VMEM((tm, C_pad), jnp.float32)],
        ),
        compiler_params=pltpu.CompilerParams(
            dimension_semantics=("parallel", "arbitrary"),
            vmem_limit_bytes=32 * 1024 * 1024),
        cost_estimate=cost,
    )(*inputs)

    return out[:M, :C]


# ---------------------------------------------------------------------------
# Plain-JAX glue: im2col, weight fake-quant, BN folding
# ---------------------------------------------------------------------------
def im2col(x_nhwc, ksize, stride, pad):
    N, H, W, C = x_nhwc.shape
    if pad:
        x_nhwc = jnp.pad(x_nhwc, ((0, 0), (pad, pad), (pad, pad), (0, 0)))
    Ho = (H + 2 * pad - ksize) // stride + 1
    Wo = (W + 2 * pad - ksize) // stride + 1
    cols = []
    for kh in range(ksize):
        for kw in range(ksize):
            patch = x_nhwc[:, kh:kh + (Ho - 1) * stride + 1:stride,
                              kw:kw + (Wo - 1) * stride + 1:stride, :]
            cols.append(patch)
    patches = jnp.concatenate(cols, axis=-1)               # (N,Ho,Wo,K*K*C)
    return patches.reshape(N * Ho * Wo, ksize * ksize * C), (N, Ho, Wo)


def fake_quant_weight_per_tensor(w):
    scale = jnp.maximum(jnp.max(jnp.abs(w)) / 127.0, 1e-12)
    q = jnp.clip(jnp.round(w / scale), -127.0, 127.0)
    return q * scale


def weight_to_matmul(w_oihw):
    # (Cout, Cin, KH, KW) -> (KH*KW*Cin, Cout), matching im2col tap order.
    cout = w_oihw.shape[0]
    return jnp.transpose(w_oihw, (2, 3, 1, 0)).reshape(-1, cout)


def bn_fold(gamma, beta, mean, var, eps=1e-5):
    s = gamma / jnp.sqrt(var + eps)
    b = beta - mean * s
    return s.astype(jnp.float32), b.astype(jnp.float32)       # (C,), (C,)


# ---------------------------------------------------------------------------
# QuantBasicBlock forward
# ---------------------------------------------------------------------------
def quant_basic_block_forward(x_nchw, params):
    x = jnp.transpose(x_nchw, (0, 2, 3, 1)).astype(jnp.float32)   # NHWC
    N, H, W, Cin = x.shape
    planes = params["w1"].shape[0]
    stride = params["stride"]

    # ---- conv1 (3x3, stride) + bn1 + act1 (QuantReLU) ----
    s1, bb1 = bn_fold(params["bn1_g"], params["bn1_b"],
                      params["bn1_m"], params["bn1_v"])
    b1 = weight_to_matmul(fake_quant_weight_per_tensor(params["w1"])) * s1[None, :]
    a1, (n, ho, wo) = im2col(x, 3, stride, 1)
    # Intermediate activation is already fake-quantized -> store it as bf16.
    out1 = fused_conv_matmul(a1, b1, bb1, None,
                             apply_relu=True, apply_quant=True,
                             act_scale=params["act1_scale"],
                             out_dtype=jnp.bfloat16)
    out1_nhwc = out1.reshape(n, ho, wo, planes)

    # ---- shortcut: 1x1 conv + bn when stride!=1 or channel change ----
    if stride != 1 or Cin != planes:
        a_sc = x[:, ::stride, ::stride, :].reshape(-1, Cin)
        s_sc, bb_sc = bn_fold(params["bnsc_g"], params["bnsc_b"],
                              params["bnsc_m"], params["bnsc_v"])
        b_sc = (weight_to_matmul(fake_quant_weight_per_tensor(params["w_sc"]))
                * s_sc[None, :])
        shortcut = fused_conv_matmul(a_sc, b_sc, bb_sc, None,
                                     apply_relu=False, apply_quant=False,
                                     act_scale=1.0, out_dtype=jnp.float32)
    else:
        # Identity shortcut: NHWC row order matches conv2's im2col row order.
        assert (H, W) == (ho, wo) and Cin == planes
        shortcut = x.reshape(-1, planes)

    # ---- conv2 (3x3, stride 1) + bn2 + residual add + act2 (QuantReLU) ----
    s2, bb2 = bn_fold(params["bn2_g"], params["bn2_b"],
                      params["bn2_m"], params["bn2_v"])
    b2 = weight_to_matmul(fake_quant_weight_per_tensor(params["w2"])) * s2[None, :]
    a2, _ = im2col(out1_nhwc, 3, 1, 1)
    out2 = fused_conv_matmul(a2, b2, bb2, shortcut,
                             apply_relu=True, apply_quant=True,
                             act_scale=params["act2_scale"],
                             out_dtype=jnp.float32)

    out_nhwc = out2.reshape(n, ho, wo, planes)
    return jnp.transpose(out_nhwc, (0, 3, 1, 2))                  # back to NCHW


# ---------------------------------------------------------------------------
if __name__ == "__main__":
    key = jax.random.PRNGKey(0)
    ks = jax.random.split(key, 16)

    in_planes, planes, stride = 4, 8, 2
    x = jax.random.normal(ks[0], (2, in_planes, 16, 16), jnp.float32)

    params = {
        "stride": stride,
        # conv weights (PyTorch OIHW layout)
        "w1": jax.random.normal(ks[1], (planes, in_planes, 3, 3), jnp.float32) * 0.2,
        "w2": jax.random.normal(ks[2], (planes, planes, 3, 3), jnp.float32) * 0.2,
        "w_sc": jax.random.normal(ks[3], (planes, in_planes, 1, 1), jnp.float32) * 0.2,
        # bn1
        "bn1_g": jax.random.uniform(ks[4], (planes,), jnp.float32, 0.5, 1.5),
        "bn1_b": jax.random.normal(ks[5], (planes,), jnp.float32) * 0.1,
        "bn1_m": jax.random.normal(ks[6], (planes,), jnp.float32) * 0.1,
        "bn1_v": jax.random.uniform(ks[7], (planes,), jnp.float32, 0.5, 1.5),
        # bn2
        "bn2_g": jax.random.uniform(ks[8], (planes,), jnp.float32, 0.5, 1.5),
        "bn2_b": jax.random.normal(ks[9], (planes,), jnp.float32) * 0.1,
        "bn2_m": jax.random.normal(ks[10], (planes,), jnp.float32) * 0.1,
        "bn2_v": jax.random.uniform(ks[11], (planes,), jnp.float32, 0.5, 1.5),
        # shortcut bn
        "bnsc_g": jax.random.uniform(ks[12], (planes,), jnp.float32, 0.5, 1.5),
        "bnsc_b": jax.random.normal(ks[13], (planes,), jnp.float32) * 0.1,
        "bnsc_m": jax.random.normal(ks[14], (planes,), jnp.float32) * 0.1,
        "bnsc_v": jax.random.uniform(ks[15], (planes,), jnp.float32, 0.5, 1.5),
        # fixed deterministic activation-quant scales (see TODO(synk) above)
        "act1_scale": 0.05,
        "act2_scale": 0.05,
    }

    out = quant_basic_block_forward(x, params)
    out = jax.block_until_ready(out)

    assert out.shape == (2, planes, 8, 8), out.shape
    assert bool(jnp.all(jnp.isfinite(out)))
    print("KERNEL_OK")
</pallas_src>

<mosaic_0001>
module attributes {stable_mosaic.version = 11 : i64} {
  func.func @_fused_matmul_kernel(%arg0: i32, %arg1: i32, %arg2: memref<64x40xbf16, #tpu.memory_space<vmem>>, %arg3: memref<40x128xbf16, #tpu.memory_space<vmem>>, %arg4: memref<1x128xf32, #tpu.memory_space<vmem>>, %arg5: memref<64x128xbf16, #tpu.memory_space<vmem>>, %arg6: memref<64x128xf32, #tpu.memory_space<vmem>>) attributes {dimension_semantics = [#tpu.dimension_semantics<parallel>, #tpu.dimension_semantics<arbitrary>], iteration_bounds = array<i64: 2, 1>, scalar_prefetch = 0 : i64, scratch_operands = 1 : i64, tpu.core_type = #tpu.core_type<tc>, window_params = [{transform_indices = @transform_0, window_bounds = array<i64: 64, 40>}, {transform_indices = @transform_1, window_bounds = array<i64: 40, 128>}, {pipeline_mode = #tpu.pipeline_mode<synchronous>, transform_indices = @transform_2, window_bounds = array<i64: 1, 128>}, {transform_indices = @transform_3, window_bounds = array<i64: 64, 128>}]} {
    %c0_i32 = arith.constant 0 : i32
    %0 = arith.cmpi eq, %arg1, %c0_i32 : i32
    %1 = arith.extui %0 : i1 to i32
    %c0_i32_0 = arith.constant 0 : i32
    %2 = arith.cmpi ne, %1, %c0_i32_0 : i32
    scf.if %2 {
      %cst_10 = arith.constant 0.000000e+00 : f32
      %12 = vector.broadcast %cst_10 : f32 to vector<64x128xf32>
      %c0_11 = arith.constant 0 : index
      %c0_12 = arith.constant 0 : index
      %13 = vector.load %arg6[%c0_11, %c0_12] : memref<64x128xf32, #tpu.memory_space<vmem>>, vector<64x128xf32>
      tpu.vector_store %arg6[%c0_11, %c0_12], %12 {strides = array<i32>} : memref<64x128xf32, #tpu.memory_space<vmem>>, vector<64x128xf32>,
    } else {
    }
    %c0 = arith.constant 0 : index
    %c0_1 = arith.constant 0 : index
    %3 = vector.load %arg6[%c0, %c0_1] : memref<64x128xf32, #tpu.memory_space<vmem>>, vector<64x128xf32>
    %c0_2 = arith.constant 0 : index
    %c0_3 = arith.constant 0 : index
    %4 = vector.load %arg2[%c0_2, %c0_3] : memref<64x40xbf16, #tpu.memory_space<vmem>>, vector<64x40xbf16>
    %c0_4 = arith.constant 0 : index
    %c0_5 = arith.constant 0 : index
    %5 = vector.load %arg3[%c0_4, %c0_5] : memref<40x128xbf16, #tpu.memory_space<vmem>>, vector<40x128xbf16>
    %cst = arith.constant dense<0.000000e+00> : vector<64x128xf32>
    %6 = tpu.matmul %4, %5, %cst {dimension_numbers = #tpu.dot_dimension_numbers<[1], [0], [0], [1], [0, 0, 1, 1], [], []>} : vector<64x40xbf16>, vector<40x128xbf16>, vector<64x128xf32> -> vector<64x128xf32>
    %7 = arith.addf %3, %6 : vector<64x128xf32>
    %c0_6 = arith.constant 0 : index
    %c0_7 = arith.constant 0 : index
    %8 = vector.load %arg6[%c0_6, %c0_7] : memref<64x128xf32, #tpu.memory_space<vmem>>, vector<64x128xf32>
    tpu.vector_store %arg6[%c0_6, %c0_7], %7 {strides = array<i32>} : memref<64x128xf32, #tpu.memory_space<vmem>>, vector<64x128xf32>,
    %c0_i32_8 = arith.constant 0 : i32
    %9 = arith.cmpi eq, %arg1, %c0_i32_8 : i32
    %10 = arith.extui %9 : i1 to i32
    %c0_i32_9 = arith.constant 0 : i32
    %11 = arith.cmpi ne, %10, %c0_i32_9 : i32
    scf.if %11 {
      %c0_10 = arith.constant 0 : index
      %c0_11 = arith.constant 0 : index
      %12 = vector.load %arg6[%c0_10, %c0_11] : memref<64x128xf32, #tpu.memory_space<vmem>>, vector<64x128xf32>
      %c0_12 = arith.constant 0 : index
      %c0_13 = arith.constant 0 : index
      %13 = vector.load %arg4[%c0_12, %c0_13] : memref<1x128xf32, #tpu.memory_space<vmem>>, vector<1x128xf32>
      %14 = vector.broadcast %13 : vector<1x128xf32> to vector<64x128xf32>
      %15 = arith.addf %12, %14 : vector<64x128xf32>
      %cst_14 = arith.constant 0.000000e+00 : f32
      %16 = vector.broadcast %cst_14 : f32 to vector<64x128xf32>
      %17 = arith.maximumf %15, %16 : vector<64x128xf32>
      %cst_15 = arith.constant 2.000000e+01 : f32
      %18 = vector.broadcast %cst_15 : f32 to vector<64x128xf32>
      %19 = arith.mulf %17, %18 : vector<64x128xf32>
      %20 = math.roundeven %19 : vector<64x128xf32>
      %cst_16 = arith.constant -1.280000e+02 : f32
      %cst_17 = arith.constant 1.270000e+02 : f32
      %21 = vector.broadcast %cst_16 : f32 to vector<64x128xf32>
      %22 = arith.maximumf %21, %20 : vector<64x128xf32>
      %23 = vector.broadcast %cst_17 : f32 to vector<64x128xf32>
      %24 = arith.minimumf %23, %22 : vector<64x128xf32>
      %cst_18 = arith.constant 5.000000e-02 : f32
      %25 = vector.broadcast %cst_18 : f32 to vector<64x128xf32>
      %26 = arith.mulf %24, %25 : vector<64x128xf32>
      %27 = arith.truncf %26 : vector<64x128xf32> to vector<64x128xbf16>
      %c0_19 = arith.constant 0 : index
      %c0_20 = arith.constant 0 : index
      %28 = vector.load %arg5[%c0_19, %c0_20] : memref<64x128xbf16, #tpu.memory_space<vmem>>, vector<64x128xbf16>
      tpu.vector_store %arg5[%c0_19, %c0_20], %27 {strides = array<i32>} : memref<64x128xbf16, #tpu.memory_space<vmem>>, vector<64x128xbf16>,
    } else {
    }
    return
  }
  func.func @transform_0(%arg0: i32, %arg1: i32) -> (i32, i32) {
    %c0_i32 = arith.constant 0 : i32
    return %arg0, %arg1 : i32, i32
  }
  func.func @transform_1(%arg0: i32, %arg1: i32) -> (i32, i32) {
    %c0_i32 = arith.constant 0 : i32
    %c0_i32_0 = arith.constant 0 : i32
    return %arg1, %c0_i32 : i32, i32
  }
  func.func @transform_2(%arg0: i32, %arg1: i32) -> (i32, i32) {
    %c0_i32 = arith.constant 0 : i32
    %c0_i32_0 = arith.constant 0 : i32
    %c0_i32_1 = arith.constant 0 : i32
    return %c0_i32, %c0_i32_0 : i32, i32
  }
  func.func @transform_3(%arg0: i32, %arg1: i32) -> (i32, i32) {
    %c0_i32 = arith.constant 0 : i32
    %c0_i32_0 = arith.constant 0 : i32
    return %arg0, %c0_i32 : i32, i32
  }
}

</mosaic_0001>

<bundles_post_ra>
// kernel: tpu_custom_call.1
= control target key start
LH: loop header
LB: loop body
LE: loop exit
PB: predicated region body
PF: predicated region fallthrough
CT: control target
= control target key end

     0   :  { %8 = vsyncpa [#allocation4], 0  ;;  %s996_s0 = inlined_call_operand.vmem [shape: bf16[128,40], index: 0, kind: input, shape index: {}]   ;;  %s997_s1 = inlined_call_operand.vmem [shape: bf16[40,128], index: 1, kind: input, shape index: {}]   ;;  %s998_s2 = inlined_call_operand.vmem [shape: f32[1,128], index: 2, kind: input, shape index: {}]   ;;  %s999_s3 = inlined_call_operand.hbm [shape: bf16[128,128], index: 3, kind: output, shape index: {}]  }
   0x1   :  { %10 = vsyncpa [#allocation4 + $0x1], 0  ;;  %s844_s12 = smov 0   ;;  %s846_s13 = smov 0  }
   0x2   :  { %s848_s14 = smov 0   ;;  %s850_s15 = smov 0  }
   0x3   :  { %s852_s16 = smov 0   ;;  %s854_s17 = smov 0  }
   0x4 LB: > { %s539_s18 = sadd.s32 4294967295, %s820_s17   ;;  %s540_s19 = sadd.s32 4294967294, %s820_s17   ;;  %s820_s17 = sphi %s854_s17, %s16_s17   ;;  %s816_s16 = sphi %s852_s16, %s1012_s16   ;;  %s812_s15 = sphi %s850_s15, %s1011_s15   ;;  %s808_s14 = sphi %s848_s14, %s1010_s14   ;;  %s804_s13 = sphi %s846_s13, %s1009_s13   ;;  %s800_s12 = sphi %s844_s12, %s1008_s12  }
   0x5   : > { %s28_s20 = sadd.s32 1, %s816_s16  ;;  %s110_s21 = sadd.s32 1, %s808_s14 }
   0x6   : > { %p30_p0 = scmp.ge.s32.totalorder %s28_s20, 2  ;;  %p120_p1 = scmp.ne.s32.totalorder %s808_s14, %s804_s13 }
   0x7   : > { %p121_p2 = scmp.eq.s32.totalorder %s539_s18, 1  ;;  %p126_p3 = scmp.ne.s32.totalorder %s804_s13, %s800_s12 }
   0x8   : > { %s1014_s20 = smov (%p30_p0, %s28_s20), 0  ;;  %p127_p5 = scmp.eq.s32.totalorder %s540_s19, 1 }
   0x9   : > { %p884_p4 = por %p121_p2, %p120_p1  ;;  %s107_s23 = ssub.s32 %s816_s16, %s1014_s20 }
   0xa   : > { %p544_p6 = scmp.ge.s32.totalorder %s820_s17, 1  ;;  %p108_p7 = scmp.eq.s32.totalorder %s107_s23, 0 }
   0xb   : > { %p891_p8 = por %p127_p5, %p126_p3  ;;  %p169_p9 = scmp.lt.s32.totalorder %s820_s17, 3 }
   0xc   : > { %s897_s25 = scalar_select %p108_p7, %s808_s14, %s110_s21  }
   0xd   : > { %p170_p10 = pnand %p544_p6, %p169_p9 }
   0xe   : > { %s546_s28 = sshll.u32 (!%p170_p10), %s812_s15, 3  ;;  %s198_s18 = sand.u32 (!%p170_p10), 1, %s804_s13  }
   0xf   : > { %173 = sbr.rel (%p170_p10) target bundleno = 210 (0xd2), region = 32  ;;  %p202_p11 = scmp.lt.s32.totalorder (!%p170_p10), %s546_s28, 15 }
  0x10   : > { %s545_s19 = sshll.u32 (!%p170_p10), %s198_s18, 5  ;;  %s587_s23 = sshll.u32 (!%p170_p10), %s812_s15, 5 }
  0x11   : > { %s200_s21 = scalar_lea.vmem (!%p170_p10), [#allocation3], %s545_s19  ;;  %s436_s15 = scalar_lea.sflag (!%p170_p10), [#allocation4], %s198_s18 }
  0x12   : > { %s448_s29 = sshll.u32 (!%p170_p10), %s200_s21, 4  ;;  %s762_s8 = scalar_lea.hbm (!%p170_p10), %s999_s3, 64  ;;  %s449_s29 = int_to_ptr.vmem [resolvable:$true] %s448_s29 }
  0x14   : > { %v250_v0 = vld [vmem:[%s997_s1 + $0x10] sm:$0xf]  ;;  %vm299_vm0 = vcmask 1043456   ;;  %s1016_s28 = smov (!%p202_p11, %s546_s28), 15  ;;  %v586_v4 = vld [vmem:[%s997_s1 + $0x8] sm:$0xff]  ;;  %v585_v5 = vld [vmem:[%s997_s1] sm:$0xff] }
  0x15   : > { %v280_v1 = vunpack.c.l.b16 %v250_v0  ;;  %s547_s4 = sshll.u32 %s1016_s28, 2  ;;  %vm286_vm1 = vcmask 326656   ;;  %v915_v10 = vld [vmem:[%s998_s2] ss:$0 sm:$0xff]  ;;  %s447_s28 = scalar_lea.hbm %s999_s3, %s587_s23 }
  0x16   : > { %s208_s9 = scalar_lea.vmem %s996_s0, %s547_s4  ;;  %s450_s30 = sshll.u32 %s447_s28, 4  ;;  %s451_s30 = int_to_ptr.hbm [resolvable:$true] %s450_s30 }
  0x17   : > { %v283_v2 = vpack.c.b16 %v280_v1, %v280_v1  ;;  %v581_v6 = vld [vmem:[%s208_s9] sm:$0xff]  ;;  %v582_v7 = vld [vmem:[%s208_s9 + $0x8] sm:$0xff]  ;;  %v583_v8 = vld [vmem:[%s208_s9 + $0x10] sm:$0xff]  ;;  %s756_s4 = sshra.s32 %s451_s30, 4  ;;  %s757_s4 = int_to_ptr.hbm [resolvable:$true] %s756_s4 }
  0x18   : > { %v584_v9 = vld [vmem:[%s208_s9 + $0x18] sm:$0xff]  ;;  %s758_s5 = scalar_lea.hbm %s757_s4, 32  ;;  %p763_p1 = scmp.lt.s32.totalorder %s757_s4, %s999_s3 }
  0x19   : > { %v301_v3 = vsel %vm299_vm0, %v283_v2, 0  ;;  %p759_p12 = scmp.ne.s32.totalorder %s757_s4, %s758_s5  ;;  %p764_p2 = scmp.lt.s32.totalorder %s762_s8, %s758_s5 }
  0x1a   : > { %308 = vmatpush.bf16.msra.mxu0 %v301_v3  ;;  %611 = vmatpush.bf16.msra.mxu1 %v301_v3 }
  0x1b   : > { %612 = vmatpush.bf16.msra.mxu2 %v301_v3  ;;  %613 = vmatpush.bf16.msra.mxu3 %v301_v3  ;;  %p760_p13 = pnand %p759_p12, %p884_p4  ;;  %p765_p3 = por %p764_p2, %p763_p1 }
  0x1d   : > { %p761_p0 = pneg %p760_p13 }
  0x1e   : > { %309 = vmatpush.bf16.msra.mxu0 %v586_v4  ;;  %614 = vmatpush.bf16.msra.mxu1 %v586_v4 }
  0x1f   : > { %615 = vmatpush.bf16.msra.mxu2 %v586_v4  ;;  %616 = vmatpush.bf16.msra.mxu3 %v586_v4  ;;  %p766_p5 = pnand %p765_p3, %p761_p0 }
  0x22   : > { %310 = vmatpush.bf16.msra.mxu0 %v585_v5  ;;  %617 = vmatpush.bf16.msra.mxu1 %v585_v5 }
  0x23   : > { %618 = vmatpush.bf16.msra.mxu2 %v585_v5  ;;  %619 = vmatpush.bf16.msra.mxu3 %v585_v5 }
  0x25   : > { %572 = vmatmul.msk.bf16.vlgmr.msra.gmra.mxu0 %vm286_vm1, %v581_v6  ;;  %573 = vmatmul.msk.bf16.vlgmr.msra.gmra.mxu1 %vm286_vm1, %v582_v7 }
  0x26   : > { %574 = vmatmul.msk.bf16.vlgmr.msra.gmra.mxu2 %vm286_vm1, %v583_v8  ;;  %575 = vmatmul.msk.bf16.vlgmr.msra.gmra.mxu3 %vm286_vm1, %v584_v9 }
  0xa2   : > { %v312_v11 = vpop.f32.mrf.mxu0  ;;  %v317_v12 = vpop.f32.mrf.mxu1 }
  0xa3   : > { %v363_v13 = vadd.f32 %v915_v10, %v312_v11  ;;  %v365_v14 = vadd.f32 %v915_v10, %v317_v12 }
  0xa5   : > { %v371_v15 = vmax.f32 %v363_v13, 0.0  ;;  %v373_v16 = vmax.f32 %v365_v14, 0.0 }
  0xa7   : > { %v379_v17 = vmul.f32 20.0, %v371_v15  ;;  %v381_v18 = vmul.f32 20.0, %v373_v16 }
  0xa9   : > { %v622_v19 = vcvt.f32.s32 %v379_v17  ;;  %v322_v20 = vpop.f32.mrf.mxu2  ;;  %v327_v21 = vpop.f32.mrf.mxu3  ;;  %v638_v22 = vcvt.f32.s32 %v381_v18  ;;  %v625_v32 = vand.u32 2147483648, %v379_v17  ;;  %v641_v37 = vand.u32 2147483648, %v381_v18 }
  0xaa   : > { %v367_v23 = vadd.f32 %v915_v10, %v322_v20  ;;  %v369_v24 = vadd.f32 %v915_v10, %v327_v21  ;;  %v314_v25 = vpop.f32.mrf.mxu0  ;;  %v319_v26 = vpop.f32.mrf.mxu1  ;;  %v620_v39 = vand.u32 2147483647, %v379_v17  ;;  %v636_v40 = vand.u32 2147483647, %v381_v18 }
  0xab   : > { %v623_v27 = vcvt.s32.f32 %v622_v19  ;;  %v364_v28 = vadd.f32 %v915_v10, %v314_v25  ;;  %v639_v29 = vcvt.s32.f32 %v638_v22  ;;  %v366_v34 = vadd.f32 %v915_v10, %v319_v26 }
  0xac   : > { %v375_v30 = vmax.f32 %v367_v23, 0.0  ;;  %v377_v31 = vmax.f32 %v369_v24, 0.0  ;;  %vm928_vm2 = vcmp.lt.f32.partialorder %v620_v39, 8388608.0  ;;  %vm932_vm3 = vcmp.lt.f32.partialorder %v636_v40, 8388608.0 }
  0xad   : > { %v372_v33 = vmax.f32 %v364_v28, 0.0  ;;  %v624_v35 = vand.u32 2147483647, %v623_v27  ;;  %v640_v36 = vand.u32 2147483647, %v639_v29  ;;  %v374_v44 = vmax.f32 %v366_v34, 0.0 }
  0xae   : > { %v923_v38 = vmul.f32 20.0, %v375_v30  ;;  %v925_v41 = vmul.f32 20.0, %v377_v31 }
  0xaf   : > { %v380_v43 = vmul.f32 20.0, %v372_v33  ;;  %v626_v45 = vor.u32 %v625_v32, %v624_v35  ;;  %v642_v46 = vor.u32 %v641_v37, %v640_v36  ;;  %v382_v55 = vmul.f32 20.0, %v374_v44 }
  0xb0   : > { %v654_v42 = vcvt.f32.s32 %v923_v38  ;;  %v670_v50 = vcvt.f32.s32 %v925_v41  ;;  %v652_v53 = vand.u32 2147483647, %v923_v38  ;;  %v657_v60 = vand.u32 2147483648, %v923_v38 }
  0xb1   : > { %v324_v51 = vpop.f32.mrf.mxu2  ;;  %v630_v52 = vcvt.f32.s32 %v380_v43  ;;  %v627_v56 = vsel %vm928_vm2, %v626_v45, %v379_v17  ;;  %v643_v57 = vsel %vm932_vm3, %v642_v46, %v381_v18  ;;  %v628_v62 = vand.u32 2147483647, %v380_v43  ;;  %v329_v0 = vpop.f32.mrf.mxu3 }
  0xb2   : > { %v655_v47 = vcvt.s32.f32 %v654_v42  ;;  %v368_v59 = vadd.f32 %v915_v10, %v324_v51  ;;  %v671_v61 = vcvt.s32.f32 %v670_v50  ;;  %v646_v63 = vcvt.f32.s32 %v382_v55 }
  0xb3   : > { %v631_v58 = vcvt.s32.f32 %v630_v52  ;;  %v668_v1 = vand.u32 2147483647, %v925_v41  ;;  %v633_v3 = vand.u32 2147483648, %v380_v43  ;;  %v395_v5 = vmax.f32 %v627_v56, -128.0 }
  0xb4   : > { %v656_v54 = vand.u32 2147483647, %v655_v47  ;;  %v376_v4 = vmax.f32 %v368_v59, 0.0  ;;  %v397_v6 = vmax.f32 %v643_v57, -128.0  ;;  %v647_v8 = vcvt.s32.f32 %v646_v63 }
  0xb5   : > { %v632_v2 = vand.u32 2147483647, %v631_v58  ;;  %v644_v11 = vand.u32 2147483647, %v382_v55  ;;  %v370_v13 = vadd.f32 %v915_v10, %v329_v0  ;;  %v672_v14 = vand.u32 2147483647, %v671_v61 }
  0xb6   : > { %v658_v7 = vor.u32 %v657_v60, %v656_v54  ;;  %v384_v12 = vmul.f32 20.0, %v376_v4  ;;  %vm629_vm4 = vcmp.lt.f32.partialorder %v628_v62, 8388608.0  ;;  %v648_v15 = vand.u32 2147483647, %v647_v8 }
  0xb7   : > { %v634_v9 = vor.u32 %v633_v3, %v632_v2  ;;  %v649_v16 = vand.u32 2147483648, %v382_v55  ;;  %vm946_vm5 = vcmp.lt.f32.partialorder %v652_v53, 8388608.0  ;;  %v673_v18 = vand.u32 2147483648, %v925_v41 }
  0xb8   : > { %v662_v20 = vcvt.f32.s32 %v384_v12  ;;  %v403_v21 = vmin.f32 %v395_v5, 127.0  ;;  %v405_v22 = vmin.f32 %v397_v6, 127.0  ;;  %v659_v10 = vsel %vm946_vm5, %v658_v7, %v923_v38 }
  0xb9   : > { %v635_v19 = vsel %vm629_vm4, %v634_v9, %v380_v43  ;;  %v650_v24 = vor.u32 %v649_v16, %v648_v15  ;;  %vm645_vm6 = vcmp.lt.f32.partialorder %v644_v11, 8388608.0  ;;  %v378_v26 = vmax.f32 %v370_v13, 0.0 }
  0xba   : > { %v396_v23 = vmax.f32 %v635_v19, -128.0  ;;  %v663_v25 = vcvt.s32.f32 %v662_v20  ;;  %v674_v27 = vor.u32 %v673_v18, %v672_v14  ;;  %v660_v30 = vand.u32 2147483647, %v384_v12 }
  0xbb   : > { %v651_v29 = vsel %vm645_vm6, %v650_v24, %v382_v55  ;;  %v665_v33 = vand.u32 2147483648, %v384_v12  ;;  %v386_v34 = vmul.f32 20.0, %v378_v26  ;;  %v411_v35 = vmul.f32 0.05, %v403_v21 }
  0xbc   : > { %v404_v28 = vmin.f32 %v396_v23, 127.0  ;;  %v398_v31 = vmax.f32 %v651_v29, -128.0  ;;  %v664_v32 = vand.u32 2147483647, %v663_v25  ;;  %v399_v36 = vmax.f32 %v659_v10, -128.0 }
  0xbd   : > { %v678_v42 = vcvt.f32.s32 %v386_v34  ;;  %v413_v38 = vmul.f32 0.05, %v405_v22  ;;  %vm669_vm7 = vcmp.lt.f32.partialorder %v668_v1, 8388608.0  ;;  %vm661_vm8 = vcmp.lt.f32.partialorder %v660_v30, 8388608.0 }
  0xbe   : > { %v412_v37 = vmul.f32 0.05, %v404_v28  ;;  %v406_v39 = vmin.f32 %v398_v31, 127.0  ;;  %v666_v40 = vor.u32 %v665_v33, %v664_v32  ;;  %v675_v44 = vsel %vm669_vm7, %v674_v27, %v925_v41 }
  0xbf   : > { %v679_v47 = vcvt.s32.f32 %v678_v42  ;;  %v407_v48 = vmin.f32 %v399_v36, 127.0  ;;  %v676_v50 = vand.u32 2147483647, %v386_v34  ;;  %v681_v53 = vand.u32 2147483648, %v386_v34 }
  0xc0   : > { %v591_v43 = vpack.c.bf16 %v412_v37, %v411_v35  ;;  %v414_v45 = vmul.f32 0.05, %v406_v39  ;;  %v667_v46 = vsel %vm661_vm8, %v666_v40, %v384_v12  ;;  %v401_v54 = vmax.f32 %v675_v44, -128.0 }
  0xc1   : > { %v400_v49 = vmax.f32 %v667_v46, -128.0  ;;  %v680_v52 = vand.u32 2147483647, %v679_v47  ;;  %v415_v57 = vmul.f32 0.05, %v407_v48  ;;  %vm677_vm9 = vcmp.lt.f32.partialorder %v676_v50, 8388608.0 }
  0xc2   : > { %592 = vst [vmem:[%s200_s21] sm:$0xff] %v591_v43   ;;  %v596_v51 = vpack.c.bf16 %v414_v45, %v413_v38  ;;  %v409_v59 = vmin.f32 %v401_v54, 127.0 }
  0xc3   : > { %v408_v55 = vmin.f32 %v400_v49, 127.0  ;;  %v682_v56 = vor.u32 %v681_v53, %v680_v52 }
  0xc4   : > { %608 = vst [vmem:[%s200_s21 + $0x8] sm:$0xff] %v596_v51   ;;  %v417_v63 = vmul.f32 0.05, %v409_v59 }
  0xc5   : > { %v416_v58 = vmul.f32 0.05, %v408_v55  ;;  %v683_v41 = vsel %vm677_vm9, %v682_v56, %v386_v34 }
  0xc6   : > { %v402_v61 = vmax.f32 %v683_v41, -128.0 }
  0xc7   : > { %v601_v60 = vpack.c.bf16 %v416_v58, %v415_v57 }
  0xc8   : > { %v410_v62 = vmin.f32 %v402_v61, 127.0 }
  0xc9   : > { %609 = vst [vmem:[%s200_s21 + $0x10] sm:$0xff] %v601_v60  }
  0xca   : > { %v418_v0 = vmul.f32 0.05, %v410_v62 }
  0xcc   : > { %v606_v1 = vpack.c.bf16 %v418_v0, %v417_v63 }
  0xce   : > { %610 = vst [vmem:[%s200_s21 + $0x18] sm:$0xff] %v606_v1  }
  0xcf   : > { %769 = shalt.err (!%p766_p5)
}
  0xd0   : > { %s822_s11 = smov 64   ;;  %s823_s18 = smov 4  }
  0xd1   : > { %684 = dma.vmem_to_hbm [thread:$0]  (%p884_p4), %s449_s29, 512, %s451_s30, %s436_s15, %s822_s11, %s822_s11, %s823_s18  }
  0xd2 PF: > { %p690_p6 = scmp.ge.s32.totalorder %s820_s17, 2  ;;  %s465_s19 = sand.u32 1, %s800_s12  }
  0xd3   : > { %s466_s21 = scalar_lea.sflag [#allocation4], %s465_s19 }
  0xd4   : > { %p687_p7 = pnand %p690_p6, %p891_p8 }
  0xd6   : > { %p688_p9 = pneg %p687_p7 }
  0xd8   : > { %795 = dma.done.wait (%p688_p9), %s466_s21, 512  }
  0xd9   : > { %797 = vsyncadd (%p688_p9), %s466_s21, 4294966784  ;;  %s16_s17 = sadd.s32 1, %s820_s17   ;;  %s1008_s12 = smov %s804_s13 }
  0xda   : > { %p13_p10 = scmp.ge.s32.totalorder %s16_s17, 4   ;;  %s1009_s13 = smov %s808_s14 }
  0xdb   : > { %s1010_s14 = smov %s897_s25  ;;  %s1011_s15 = smov %s816_s16 }
  0xdc   : > { %s1012_s16 = smov %s1014_s20  ;;  %15 = sbr.rel (!%p13_p10) target bundleno = 4 (0x4), region = 78 }
  0xe1   :  { %472 = vsyncpa [#allocation4], 1 }
  0xe2   :  { %474 = vsyncpa [#allocation4 + $0x1], 1 }

</bundles_post_ra>
